<compile_context>
chip_gen: v5e
topology: v5e:2x2
jax: 0.10.0
libtpu: 0.0.40
codegen_flags: <defaults>
</compile_context>

<pallas_src>
import jax
import jax.numpy as jnp
import jax.scipy.linalg as jsl
from jax.experimental import pallas as pl
from jax.experimental.pallas import tpu as pltpu

# Globals from the reference file
jitter = 0.01
nt = 50
nx = 3

_LANE = 128
_PAD_VALUE = 1.0e6   # padded rows sit "far away": exp(-d2) underflows to exactly 0


def _round_up(x, m):
    return (x + m - 1) // m * m


# ----------------------------- Pallas kernels ------------------------------ #

def _sigma_kxt_kernel(scalars_ref, xrow_ref, xcolT_ref, xteT_ref,
                      sigma_ref, kxt_ref):
    """One (T, T) tile of Sigma and (at j == 0) one (T, Mp) row strip of kxT.

    scalars (SMEM, (3,)): [log_scale, noise, scale], noise = exp(-log_beta)+jitter
    xrow  : (T, D)   row strip of X / length_scale        (rows i*T .. i*T+T)
    xcolT : (D, T)   column strip of (X / length_scale)^T (cols j*T .. j*T+T)
    xteT  : (D, Mp)  (Xte / length_scale)^T (whole array, resident)
    sigma : (T, T)   K(X,X) tile, + (beta^-1 + jitter)*I on diagonal tiles only
    kxt   : (T, Mp)  K(X, Xte) row strip, written once per row tile
    """
    i = pl.program_id(0)
    j = pl.program_id(1)
    log_scale = scalars_ref[0]
    noise = scalars_ref[1]

    x1 = xrow_ref[...]                               # (T, D)
    x2 = xcolT_ref[...]                              # (D, T)
    D = x1.shape[1]

    # Squared distance on the VPU: d2 = sum_d (x1_d - x2_d)^2  (>= 0 exactly).
    diff = x1[:, 0:1] - x2[0:1, :]                   # (T,1)-(1,T) -> (T,T)
    d2 = diff * diff                                 # no zeros-init materialization
    for d in range(1, D):                            # static unroll, D is tiny
        diff = x1[:, d:d + 1] - x2[d:d + 1, :]
        d2 = d2 + diff * diff
    k = jnp.exp(log_scale - d2)                      # EUP exp, scale folded in

    @pl.when(i != j)
    def _():
        sigma_ref[...] = k

    @pl.when(i == j)                                 # only diagonal tiles pay iota/select
    def _():
        T = sigma_ref.shape[0]
        r = jax.lax.broadcasted_iota(jnp.int32, (T, T), 0)
        c = jax.lax.broadcasted_iota(jnp.int32, (T, T), 1)
        sigma_ref[...] = k + jnp.where(r == c, noise, jnp.float32(0.0))

    @pl.when(j == 0)                                 # kxT row strip once per row tile
    def _():
        xte = xteT_ref[...]                          # (D, Mp)
        dk = x1[:, 0:1] - xte[0:1, :]
        d2k = dk * dk
        for d in range(1, D):
            dk = x1[:, d:d + 1] - xte[d:d + 1, :]
            d2k = d2k + dk * dk
        kxt_ref[...] = jnp.exp(log_scale - d2k)


def sigma_kxt_pallas(scalars, xs, xsT, xteT, tile):
    Np, D = xs.shape
    Mp = xteT.shape[1]
    nr = Np // tile
    cost = pl.CostEstimate(
        flops=int((3 * D + 2) * (Np * Np + Np * Mp)),
        transcendentals=int(Np * Np + Np * Mp),
        bytes_accessed=int(4 * (2 * Np * D + D * Mp + Np * Np + Np * Mp)),
    )
    return pl.pallas_call(
        _sigma_kxt_kernel,
        out_shape=(jax.ShapeDtypeStruct((Np, Np), jnp.float32),
                   jax.ShapeDtypeStruct((Np, Mp), jnp.float32)),
        grid=(nr, nr),
        in_specs=[
            pl.BlockSpec(memory_space=pltpu.MemorySpace.SMEM),      # scalars
            pl.BlockSpec((tile, D), lambda i, j: (i, 0)),           # X row strip
            pl.BlockSpec((D, tile), lambda i, j: (0, j)),           # X^T column strip
            pl.BlockSpec((D, Mp), lambda i, j: (0, 0)),             # Xte^T (resident)
        ],
        out_specs=(
            pl.BlockSpec((tile, tile), lambda i, j: (i, j)),        # Sigma tile
            pl.BlockSpec((tile, Mp), lambda i, j: (i, 0)),          # kxT (revisited over j)
        ),
        compiler_params=pltpu.CompilerParams(
            dimension_semantics=("parallel", "arbitrary"),
            vmem_limit_bytes=32 * 1024 * 1024,
        ),
        cost_estimate=cost,
    )(scalars, xs, xsT, xteT)


def _finish_kernel(scalars_ref, kxt_ref, a_ref, alpha_ref, out_ref):
    """mean / predictive-variance diagonal for one lane tile of test points.

    scalars (SMEM, (3,)): [log_scale, noise, scale]
    kxt   : (Np, TM)  K(X, Xte) lane strip
    a     : (Np, 1)   Sigma^{-1} (Y*gain - bias)    (padded rows are exactly 0)
    alpha : (Np, TM)  L^{-1} kxT lane strip         (padded rows are exactly 0)
    out   : (2, TM)   row 0 = mean, row 1 = var_diag   (lane-dense)
    """
    kxt = kxt_ref[...]
    a = a_ref[...]
    alpha = alpha_ref[...]
    # VPU multiply + sublane reduce (no 1-wide MXU matvec), lane-dense stores.
    out_ref[0:1, :] = jnp.sum(kxt * a, axis=0, keepdims=True)
    out_ref[1:2, :] = scalars_ref[2] - jnp.sum(alpha * alpha, axis=0, keepdims=True)


def finish_pallas(scalars, kxt, a, alpha, tile_m):
    Np, Mp = kxt.shape
    cost = pl.CostEstimate(
        flops=int(4 * Np * Mp + Mp),
        transcendentals=0,
        bytes_accessed=int(4 * (2 * Np * Mp + Np + 2 * Mp)),
    )
    return pl.pallas_call(
        _finish_kernel,
        out_shape=jax.ShapeDtypeStruct((2, Mp), jnp.float32),
        grid=(Mp // tile_m,),
        in_specs=[
            pl.BlockSpec(memory_space=pltpu.MemorySpace.SMEM),      # scalars
            pl.BlockSpec((Np, tile_m), lambda m: (0, m)),           # kxT lane strip
            pl.BlockSpec((Np, 1), lambda m: (0, 0)),                # A (resident)
            pl.BlockSpec((Np, tile_m), lambda m: (0, m)),           # alpha lane strip
        ],
        out_specs=pl.BlockSpec((2, tile_m), lambda m: (0, m)),
        compiler_params=pltpu.CompilerParams(
            dimension_semantics=("parallel",),
            vmem_limit_bytes=32 * 1024 * 1024,
        ),
        cost_estimate=cost,
    )(scalars, kxt, a, alpha)


# ------------------------------ GPR forward -------------------------------- #

def gpr_forward(X, Y, Xte, params, tile=_LANE):
    """Mirrors gpr.forward(Xte) from the PyTorch module."""
    N, D = X.shape
    M = Xte.shape[0]
    Np = _round_up(N, tile)
    Mp = _round_up(M, _LANE)

    inv_ls = (1.0 / jnp.exp(params["log_length_scale"])).reshape(1, -1).astype(jnp.float32)
    log_scale = params["log_scale"].reshape(()).astype(jnp.float32)
    scale = jnp.exp(log_scale)
    noise = (jnp.exp(-params["log_beta"])[0] + jitter).astype(jnp.float32)
    scalars = jnp.stack([log_scale, noise, scale]).astype(jnp.float32)   # (3,) -> SMEM

    # Pad to lane multiples with a large constant: padded<->real RBF entries
    # underflow to exactly 0, padded Sigma block is scale*J + noise*I (PD),
    # so the padded Cholesky / solves leave the first N rows exact.
    Xp = jnp.full((Np, D), _PAD_VALUE, jnp.float32).at[:N].set(X.astype(jnp.float32))
    Xtep = jnp.full((Mp, D), _PAD_VALUE, jnp.float32).at[:M].set(Xte.astype(jnp.float32))

    # Hoisted 1/length_scale scaling (shared by both kernel matrices).
    Xs = Xp * inv_ls                                                     # (Np, D)
    Xtes = Xtep * inv_ls                                                 # (Mp, D)
    XsT = Xs.T                                                           # (D, Np)
    XtesT = Xtes.T                                                       # (D, Mp)

    # One fused launch, two separate lane-dense outputs (no post-call slicing).
    Sigma, kxT = sigma_kxt_pallas(scalars, Xs, XsT, XtesT, tile)         # (Np,Np),(Np,Mp)

    # Y centering: bias.view(-1,1).repeat(nt,1) -> tiled pattern [b0,b1,b2,b0,...]
    y_bias = jnp.tile(params["bias"].reshape(-1, 1), (nt, 1))            # (nt*nx, 1)
    Yc = (Y * params["gain"] - y_bias).astype(jnp.float32)               # (N, 1)
    Ycp = jnp.zeros((Np, 1), jnp.float32).at[:N].set(Yc)                 # zero-padded

    # Cholesky + solves (plain JAX glue; no Pallas equivalent).
    # kxT is already (N, M) so no transposes are needed around the solve.
    L = jnp.linalg.cholesky(Sigma)                                       # lower
    A = jsl.cho_solve((L, True), Ycp)                                    # (Np, 1)
    alpha = jsl.solve_triangular(L, kxT, lower=True)                     # (Np, Mp)

    mv = finish_pallas(scalars, kxT, A.astype(jnp.float32),
                       alpha.astype(jnp.float32), _LANE)                 # (2, Mp)
    mean = mv[0, :M].reshape(M, 1)
    var_diag = mv[1, :M].reshape(M, 1)
    return mean, var_diag


def _reference_forward(X, Y, Xte, params):
    # Pure-JAX reference (same math, no Pallas, no padding) for a sanity check.
    N = X.shape[0]
    ls = jnp.exp(params["log_length_scale"]).reshape(1, -1)
    s = jnp.exp(params["log_scale"])[0]

    def kc(a, b):
        a = a / ls
        b = b / ls
        na = jnp.sum(a * a, axis=1, keepdims=True)
        nb = jnp.sum(b * b, axis=1, keepdims=True)
        d2 = -2.0 * a @ b.T + na + nb.T
        return s * jnp.exp(-d2)

    noise = jnp.exp(-params["log_beta"])[0] + jitter
    Sigma = kc(X, X) + noise * jnp.eye(N, dtype=jnp.float32)
    kx = kc(Xte, X)
    y_bias = jnp.tile(params["bias"].reshape(-1, 1), (nt, 1))
    Yc = Y * params["gain"] - y_bias
    L = jnp.linalg.cholesky(Sigma)
    mean = kx @ jsl.cho_solve((L, True), Yc)
    alpha = jsl.solve_triangular(L, kx.T, lower=True)
    var = s - jnp.sum(alpha * alpha, axis=0).reshape(-1, 1)
    return mean, var


# --------------------------------- main ------------------------------------ #

if __name__ == "__main__":
    key = jax.random.PRNGKey(0)
    kx_, ky_, kt_ = jax.random.split(key, 3)

    N = nt * nx   # 150, implied by the module (y_bias has nt*nx rows)
    D = 2         # matches the global length_scale = [0.5, 0.1]
    M = 10        # number of test points

    X = jax.random.normal(kx_, (N, D), dtype=jnp.float32)
    Y = jax.random.normal(ky_, (N, 1), dtype=jnp.float32)
    Xte = jax.random.normal(kt_, (M, D), dtype=jnp.float32)

    # Deterministic parameter init, exactly as in gpr.__init__
    params = {
        "log_beta": jnp.zeros((1,), jnp.float32),
        "log_length_scale": jnp.zeros((D,), jnp.float32),
        "log_scale": jnp.zeros((1,), jnp.float32),
        "bias": jnp.zeros((nx,), jnp.float32),
        "gain": jnp.ones((1,), jnp.float32),
    }

    mean, var_diag = gpr_forward(X, Y, Xte, params)
    jax.block_until_ready((mean, var_diag))

    mean_ref, var_ref = _reference_forward(X, Y, Xte, params)
    assert mean.shape == (M, 1) and var_diag.shape == (M, 1)
    assert bool(jnp.all(jnp.isfinite(mean))) and bool(jnp.all(jnp.isfinite(var_diag)))
    assert bool(jnp.allclose(mean, mean_ref, atol=2e-2, rtol=2e-2))
    assert bool(jnp.allclose(var_diag, var_ref, atol=2e-2, rtol=2e-2))

    print("KERNEL_OK")
</pallas_src>

<mosaic_0001>
module attributes {stable_mosaic.version = 11 : i64} {
  func.func @_sigma_kxt_kernel(%arg0: i32, %arg1: i32, %arg2: memref<3xf32, #tpu.memory_space<smem>>, %arg3: memref<128x2xf32, #tpu.memory_space<vmem>>, %arg4: memref<2x128xf32, #tpu.memory_space<vmem>>, %arg5: memref<2x128xf32, #tpu.memory_space<vmem>>, %arg6: memref<128x128xf32, #tpu.memory_space<vmem>>, %arg7: memref<128x128xf32, #tpu.memory_space<vmem>>) attributes {dimension_semantics = [#tpu.dimension_semantics<parallel>, #tpu.dimension_semantics<arbitrary>], iteration_bounds = array<i64: 2, 2>, scalar_prefetch = 0 : i64, scratch_operands = 0 : i64, tpu.core_type = #tpu.core_type<tc>, window_params = [{transform_indices = @transform_0, window_bounds = array<i64: 3>}, {transform_indices = @transform_1, window_bounds = array<i64: 128, 2>}, {transform_indices = @transform_2, window_bounds = array<i64: 2, 128>}, {pipeline_mode = #tpu.pipeline_mode<synchronous>, transform_indices = @transform_3, window_bounds = array<i64: 2, 128>}, {transform_indices = @transform_4, window_bounds = array<i64: 128, 128>}, {transform_indices = @transform_5, window_bounds = array<i64: 128, 128>}]} {
    %c0 = arith.constant 0 : index
    %0 = memref.load %arg2[%c0] : memref<3xf32, #tpu.memory_space<smem>>
    %c1 = arith.constant 1 : index
    %1 = memref.load %arg2[%c1] : memref<3xf32, #tpu.memory_space<smem>>
    %c0_0 = arith.constant 0 : index
    %c0_1 = arith.constant 0 : index
    %2 = vector.load %arg3[%c0_0, %c0_1] : memref<128x2xf32, #tpu.memory_space<vmem>>, vector<128x2xf32>
    %c0_2 = arith.constant 0 : index
    %c0_3 = arith.constant 0 : index
    %3 = vector.load %arg4[%c0_2, %c0_3] : memref<2x128xf32, #tpu.memory_space<vmem>>, vector<2x128xf32>
    %4 = vector.extract_strided_slice %2 {offsets = [0, 0], sizes = [128, 1], strides = [1, 1]} : vector<128x2xf32> to vector<128x1xf32>
    %5 = vector.extract_strided_slice %3 {offsets = [0, 0], sizes = [1, 128], strides = [1, 1]} : vector<2x128xf32> to vector<1x128xf32>
    %6 = vector.broadcast %4 : vector<128x1xf32> to vector<128x128xf32>
    %7 = vector.broadcast %5 : vector<1x128xf32> to vector<128x128xf32>
    %8 = arith.subf %6, %7 : vector<128x128xf32>
    %9 = arith.mulf %8, %8 : vector<128x128xf32>
    %10 = vector.extract_strided_slice %2 {offsets = [0, 1], sizes = [128, 1], strides = [1, 1]} : vector<128x2xf32> to vector<128x1xf32>
    %11 = vector.extract_strided_slice %3 {offsets = [1, 0], sizes = [1, 128], strides = [1, 1]} : vector<2x128xf32> to vector<1x128xf32>
    %12 = vector.broadcast %10 : vector<128x1xf32> to vector<128x128xf32>
    %13 = vector.broadcast %11 : vector<1x128xf32> to vector<128x128xf32>
    %14 = arith.subf %12, %13 : vector<128x128xf32>
    %15 = arith.mulf %14, %14 : vector<128x128xf32>
    %16 = arith.addf %9, %15 : vector<128x128xf32>
    %17 = vector.broadcast %0 : f32 to vector<128x128xf32>
    %18 = arith.subf %17, %16 : vector<128x128xf32>
    %19 = math.exp %18 : vector<128x128xf32>
    %20 = arith.cmpi ne, %arg0, %arg1 : i32
    %21 = arith.extui %20 : i1 to i32
    %c0_i32 = arith.constant 0 : i32
    %22 = arith.cmpi ne, %21, %c0_i32 : i32
    scf.if %22 {
      %c0_7 = arith.constant 0 : index
      %c0_8 = arith.constant 0 : index
      %29 = vector.load %arg6[%c0_7, %c0_8] : memref<128x128xf32, #tpu.memory_space<vmem>>, vector<128x128xf32>
      tpu.vector_store %arg6[%c0_7, %c0_8], %19 {strides = array<i32>} : memref<128x128xf32, #tpu.memory_space<vmem>>, vector<128x128xf32>,
    } else {
    }
    %23 = arith.cmpi eq, %arg0, %arg1 : i32
    %24 = arith.extui %23 : i1 to i32
    %c0_i32_4 = arith.constant 0 : i32
    %25 = arith.cmpi ne, %24, %c0_i32_4 : i32
    scf.if %25 {
      %29 = tpu.iota {dimensions = array<i32: 0>} : vector<128x128xi32>
      %30 = tpu.iota {dimensions = array<i32: 1>} : vector<128x128xi32>
      %31 = arith.cmpi eq, %29, %30 : vector<128x128xi32>
      %cst = arith.constant 0.000000e+00 : f32
      %32 = vector.broadcast %1 : f32 to vector<128x128xf32>
      %33 = vector.broadcast %cst : f32 to vector<128x128xf32>
      %34 = arith.select %31, %32, %33 : vector<128x128xi1>, vector<128x128xf32>
      %35 = arith.addf %19, %34 : vector<128x128xf32>
      %c0_7 = arith.constant 0 : index
      %c0_8 = arith.constant 0 : index
      %36 = vector.load %arg6[%c0_7, %c0_8] : memref<128x128xf32, #tpu.memory_space<vmem>>, vector<128x128xf32>
      tpu.vector_store %arg6[%c0_7, %c0_8], %35 {strides = array<i32>} : memref<128x128xf32, #tpu.memory_space<vmem>>, vector<128x128xf32>,
    } else {
    }
    %c0_i32_5 = arith.constant 0 : i32
    %26 = arith.cmpi eq, %arg1, %c0_i32_5 : i32
    %27 = arith.extui %26 : i1 to i32
    %c0_i32_6 = arith.constant 0 : i32
    %28 = arith.cmpi ne, %27, %c0_i32_6 : i32
    scf.if %28 {
      %c0_7 = arith.constant 0 : index
      %c0_8 = arith.constant 0 : index
      %29 = vector.load %arg5[%c0_7, %c0_8] : memref<2x128xf32, #tpu.memory_space<vmem>>, vector<2x128xf32>
      %30 = vector.extract_strided_slice %2 {offsets = [0, 0], sizes = [128, 1], strides = [1, 1]} : vector<128x2xf32> to vector<128x1xf32>
      %31 = vector.extract_strided_slice %29 {offsets = [0, 0], sizes = [1, 128], strides = [1, 1]} : vector<2x128xf32> to vector<1x128xf32>
      %32 = vector.broadcast %30 : vector<128x1xf32> to vector<128x128xf32>
      %33 = vector.broadcast %31 : vector<1x128xf32> to vector<128x128xf32>
      %34 = arith.subf %32, %33 : vector<128x128xf32>
      %35 = arith.mulf %34, %34 : vector<128x128xf32>
      %36 = vector.extract_strided_slice %2 {offsets = [0, 1], sizes = [128, 1], strides = [1, 1]} : vector<128x2xf32> to vector<128x1xf32>
      %37 = vector.extract_strided_slice %29 {offsets = [1, 0], sizes = [1, 128], strides = [1, 1]} : vector<2x128xf32> to vector<1x128xf32>
      %38 = vector.broadcast %36 : vector<128x1xf32> to vector<128x128xf32>
      %39 = vector.broadcast %37 : vector<1x128xf32> to vector<128x128xf32>
      %40 = arith.subf %38, %39 : vector<128x128xf32>
      %41 = arith.mulf %40, %40 : vector<128x128xf32>
      %42 = arith.addf %35, %41 : vector<128x128xf32>
      %43 = vector.broadcast %0 : f32 to vector<128x128xf32>
      %44 = arith.subf %43, %42 : vector<128x128xf32>
      %45 = math.exp %44 : vector<128x128xf32>
      %c0_9 = arith.constant 0 : index
      %c0_10 = arith.constant 0 : index
      %46 = vector.load %arg7[%c0_9, %c0_10] : memref<128x128xf32, #tpu.memory_space<vmem>>, vector<128x128xf32>
      tpu.vector_store %arg7[%c0_9, %c0_10], %45 {strides = array<i32>} : memref<128x128xf32, #tpu.memory_space<vmem>>, vector<128x128xf32>,
    } else {
    }
    return
  }
  func.func @transform_0(%arg0: i32, %arg1: i32) -> i32 {
    %c0_i32 = arith.constant 0 : i32
    %c0_i32_0 = arith.constant 0 : i32
    return %c0_i32 : i32
  }
  func.func @transform_1(%arg0: i32, %arg1: i32) -> (i32, i32) {
    %c0_i32 = arith.constant 0 : i32
    %c0_i32_0 = arith.constant 0 : i32
    return %arg0, %c0_i32 : i32, i32
  }
  func.func @transform_2(%arg0: i32, %arg1: i32) -> (i32, i32) {
    %c0_i32 = arith.constant 0 : i32
    %c0_i32_0 = arith.constant 0 : i32
    return %c0_i32, %arg1 : i32, i32
  }
  func.func @transform_3(%arg0: i32, %arg1: i32) -> (i32, i32) {
    %c0_i32 = arith.constant 0 : i32
    %c0_i32_0 = arith.constant 0 : i32
    %c0_i32_1 = arith.constant 0 : i32
    return %c0_i32, %c0_i32_0 : i32, i32
  }
  func.func @transform_4(%arg0: i32, %arg1: i32) -> (i32, i32) {
    %c0_i32 = arith.constant 0 : i32
    return %arg0, %arg1 : i32, i32
  }
  func.func @transform_5(%arg0: i32, %arg1: i32) -> (i32, i32) {
    %c0_i32 = arith.constant 0 : i32
    %c0_i32_0 = arith.constant 0 : i32
    return %arg0, %c0_i32 : i32, i32
  }
}

</mosaic_0001>

<bundles_post_ra>
// kernel: tpu_custom_call.1
= control target key start
LH: loop header
LB: loop body
LE: loop exit
PB: predicated region body
PF: predicated region fallthrough
CT: control target
= control target key end

     0   :  { %s2064_s0 = inlined_call_operand.vmem [shape: f32[3], index: 0, kind: input, shape index: {}]   ;;  %s2065_s1 = inlined_call_operand.vmem [shape: f32[256,2], index: 1, kind: input, shape index: {}]   ;;  %s2066_s2 = inlined_call_operand.vmem [shape: f32[2,256], index: 2, kind: input, shape index: {}]   ;;  %s2067_s3 = inlined_call_operand.vmem [shape: f32[2,128], index: 3, kind: input, shape index: {}]   ;;  %s2068_s4 = inlined_call_operand.hbm [shape: f32[256,256], index: 4, kind: output, shape index: {0}]   ;;  %s2069_s5 = inlined_call_operand.hbm [shape: f32[256,128], index: 5, kind: output, shape index: {1}]  }
   0x1   :  { %2077 = sst [smem:[#allocation16_spill]] %s2064_s0 }
   0x2   :  { %2078 = sst [smem:[#allocation17_spill]] %s2065_s1 }
   0x3   :  { %2079 = sst [smem:[#allocation18_spill]] %s2066_s2 }
   0x4   :  { %2080 = sst [smem:[#allocation19_spill]] %s2067_s3 }
   0x5   :  { %2081 = sst [smem:[#allocation20_spill]] %s2068_s4 }
   0x6   :  { %11 = vsyncpa [#allocation4], 0 }
   0x7   :  { %12 = vsyncpa [#allocation3], 0 }
   0x8   :  { %14 = vsyncpa [#allocation3 + $0x1], 0 }
   0x9   :  { %15 = vsyncpa [#allocation7], 0 }
   0xa   :  { %17 = vsyncpa [#allocation7 + $0x1], 0  ;;  %s1428_s18 = smov 0   ;;  %s1430_s19 = smov 0  }
   0xb   :  { %s1432_s20 = smov 0   ;;  %s1434_s21 = smov 0  }
   0xc   :  { %s1436_s22 = smov 0   ;;  %s1438_s23 = smov 0  }
   0xd   :  { %s1440_s24 = smov 0   ;;  %s1442_s25 = smov 0  }
   0xe   :  { %s1444_s26 = smov 0   ;;  %s1446_s27 = smov 0  }
   0xf   :  { %s1448_s28 = smov 0  }
  0x10 LB: > { %2082 = sst [smem:[#allocation11_spill]] %s1382_s26  ;;  %s2070_s29 = sadd.s32 4294967295, %s1390_s28   ;;  %s1390_s28 = sphi %s1448_s28, %s23_s28   ;;  %s1386_s27 = sphi %s1446_s27, %s2105_s27   ;;  %s1382_s26 = sphi %s1444_s26, %s2104_s26   ;;  %s1378_s25 = sphi %s1442_s25, %s2103_s25   ;;  %s1374_s24 = sphi %s1440_s24, %s2102_s24   ;;  %s1370_s23 = sphi %s1438_s23, %s2111_s23   ;;  %s1366_s22 = sphi %s1436_s22, %s2110_s22   ;;  %s1362_s21 = sphi %s1434_s21, %s2109_s21   ;;  %s1358_s20 = sphi %s1432_s20, %s2108_s20   ;;  %s1354_s19 = sphi %s1430_s19, %s2107_s19   ;;  %s1350_s18 = sphi %s1428_s18, %s2106_s18  }
  0x11   : > { %2083 = sst [smem:[#allocation12_spill]] %s1386_s27  ;;  %s1009_s30 = sadd.s32 4294967294, %s1390_s28  }
  0x12   : > { %s32_s6 = sadd.s32 1, %s1382_s26  ;;  %s35_s7 = sadd.s32 1, %s1386_s27 }
  0x13   : > { %p33_p0 = scmp.ge.s32.totalorder %s32_s6, 2  ;;  %s138_s8 = sadd.s32 1, %s1370_s23 }
  0x14   : > { %p148_p1 = scmp.ne.s32.totalorder %s1370_s23, %s1366_s22  ;;  %p1492_p2 = scmp.eq.s32.totalorder %s2070_s29, 3 }
  0x15   : > { %s2113_s6 = smov (%p33_p0, %s32_s6), 0  ;;  %s2115_s7 = smov (!%p33_p0, %s35_s7), %s1386_s27 }
  0x16   : > { %2085 = sst [smem:[#allocation13_spill]] %s2113_s6  ;;  %s134_s10 = ssub.s32 %s1382_s26, %s2113_s6 }
  0x17   : > { %p1503_p3 = por %p1492_p2, %p148_p1  ;;  %p37_p4 = scmp.ge.s32.totalorder %s2115_s7, 2 }
  0x18   : > { %p154_p5 = scmp.ne.s32.totalorder %s1366_s22, %s1362_s21  ;;  %p1509_p6 = scmp.eq.s32.totalorder %s1009_s30, 3 }
  0x19   : > { %s164_s13 = sadd.s32 1, %s1358_s20  ;;  %s2117_s7 = smov (%p37_p4, %s2115_s7), 0 }
  0x1a   : > { %2088 = sst [smem:[#allocation14_spill]] %s2117_s7  ;;  %p1518_p7 = por %p1509_p6, %p154_p5 }
  0x1b   : > { %p174_p8 = scmp.ne.s32.totalorder %s1358_s20, %s1354_s19  ;;  %s133_s15 = ssub.s32 %s1386_s27, %s2117_s7 }
  0x1c   : > { %p180_p9 = scmp.ne.s32.totalorder %s1354_s19, %s1350_s18  ;;  %s135_s16 = sor.u32 %s134_s10, %s133_s15 }
  0x1d   : > { %p162_p10 = scmp.eq.s32.totalorder %s133_s15, 0  ;;  %p136_p11 = scmp.eq.s32.totalorder %s135_s16, 0 }
  0x1e   : > { %p1530_p12 = por %p174_p8, %p1492_p2  ;;  %p1542_p13 = por %p180_p9, %p1509_p6 }
  0x1f   : > { %s1535_s30 = scalar_select %p162_p10, %s1358_s20, %s164_s13  }
  0x20   : > { %s1538_s29 = scalar_select %p136_p11, %s1370_s23, %s138_s8  }
  0x21   : > { %p1010_p0 = scmp.ge.s32.totalorder %s1390_s28, 1  ;;  %p188_p1 = scmp.lt.s32.totalorder %s1390_s28, 5 }
  0x22   : > { %2091 = sst [smem:[#allocation15_spill]] %s1538_s29  ;;  %s2093_s7 = sadd.s32 4294967295, %s1390_s28  }
  0x23   : > { %p1054_p4 = scmp.eq.s32.totalorder %s2093_s7, 0  ;;  %p189_p5 = pnand %p1010_p0, %p188_p1 }
  0x24   : > { %s2094_s0 = sld [smem:[#allocation16_spill]]  ;;  %s1392_s13 = smov [#allocation2]  }
  0x25   : > { %p1043_p2 = pneg %p189_p5 }
  0x27   : > { %p1044_p8 = pnand %p1054_p4, %p1043_p2  ;;  %232 = sbr.rel (%p189_p5) target bundleno = 409 (0x199), region = 36 }
  0x2a   : > { %s200_s15 = sshll.u32 %s2094_s0, 4  ;;  %s201_s15 = int_to_ptr.vmem [resolvable:$true] %s200_s15 }
  0x2b   : > { %1046 = dma.vmem_to_smem (!%p1044_p8), %s201_s15, 16, %s1392_s13, [#allocation4]  }
  0x2c   : > { %1337 = dma.done.wait (%p1054_p4), [#allocation4], 16  }
  0x2d   : > { %1339 = vsyncadd (%p1054_p4), [#allocation4], 4294967280 }
  0x2e   : > { %239 = sfence }
  0x2f   : > { %s1017_s8 = sshll.u32 %s1378_s25, 4  ;;  %v1393_v0 = vmov 0   ;;  %s2095_s1 = sld [smem:[#allocation17_spill]]  ;;  %v1394_v17 = vmov 1  }
  0x30   : > { %1153 = vset.pattern.permute.xlu2 %v1393_v0  ;;  %1152 = vset.pattern.permute.xlu1 %v1393_v0  ;;  %p272_p6 = scmp.lt.s32.totalorder %s1017_s8, 31  ;;  %s2074_s9 = sand.u32 1, %s1366_s22  }
  0x31   : > { %1151 = vset.pattern.permute.xlu0 %v1393_v0  ;;  %s2073_s15 = sand.u32 1, %s1354_s19   ;;  %s1579_s13 = sshll.u32 %s2074_s9, 7 }
  0x32   : > { %s2119_s8 = smov (!%p272_p6, %s1017_s8), 31  ;;  %p277_p9 = scmp.lt.s32.totalorder %s1374_s24, 1 }
  0x33   : > { %s1018_s7 = sshll.u32 %s2119_s8, 3  ;;  %s1583_s8 = sshll.u32 %s2073_s15, 7 }
  0x34   : > { %s278_s12 = scalar_select %p277_p9, %s1374_s24, 1 }
  0x35   : > { %s1557_s10 = scalar_lea.vmem %s2095_s1, %s1018_s7  ;;  %s1585_s7 = sld [smem:[#allocation2 + $0x1]] }
  0x36   : > { %v289_v1 = vld [vmem:[%s1557_s10 + $0x20] sm:$0xff]  ;;  %v287_v2 = vld [vmem:[%s1557_s10 + $0x10] sm:$0xff]  ;;  %v290_v4 = vld [vmem:[%s1557_s10 + $0x28] sm:$0xff]  ;;  %s1019_s16 = sshll.u32 %s278_s12, 1  ;;  %s2096_s2 = sld [smem:[#allocation18_spill]] }
  0x37   : > { %v285_v3 = vld [vmem:[%s1557_s10] sm:$0xff]  ;;  %324 = vperm.xlu2 %1153, %v289_v1   ;;  %314 = vperm.xlu1 %1152, %v287_v2   ;;  %v288_v5 = vld [vmem:[%s1557_s10 + $0x18] sm:$0xff]  ;;  %v286_v6 = vld [vmem:[%s1557_s10 + $0x8] sm:$0xff]  ;;  %s283_s0 = sld [smem:[#allocation2]]  ;;  %p1021_p10 = scmp.eq.s32.totalorder %s1378_s25, %s1374_s24 }
  0x38   : > { %304 = vperm.xlu0 %1151, %v285_v3   ;;  %v293_v7 = vld [vmem:[%s1557_s10 + $0x40] sm:$0xff]  ;;  %v292_v8 = vld [vmem:[%s1557_s10 + $0x38] sm:$0xff]  ;;  %v291_v9 = vld [vmem:[%s1557_s10 + $0x30] sm:$0xff] }
  0x39   : > { %v296_v10 = vld [vmem:[%s1557_s10 + $0x58] sm:$0xff]  ;;  %v295_v11 = vld [vmem:[%s1557_s10 + $0x50] sm:$0xff]  ;;  %v294_v12 = vld [vmem:[%s1557_s10 + $0x48] sm:$0xff] }
  0x3a   : > { %v299_v13 = vld [vmem:[%s1557_s10 + $0x70] sm:$0xff]  ;;  %v298_v14 = vld [vmem:[%s1557_s10 + $0x68] sm:$0xff]  ;;  %v297_v15 = vld [vmem:[%s1557_s10 + $0x60] sm:$0xff] }
  0x3b   : > { %v300_v16 = vld [vmem:[%s1557_s10 + $0x78] sm:$0xff] }
  0x3c   : > { %s280_s9 = scalar_lea.vmem %s2096_s2, %s1019_s16 }
  0x3d   : > { %v301_v27 = vld [vmem:[%s280_s9] sm:$0x3]  ;;  %v1624_v37 = vstv %s283_s0  ;;  %s1775_s0 = scalar_lea.vmem [#allocation5], %s1579_s13  ;;  %s1778_s9 = scalar_lea.vmem [#allocation6], %s1583_s8 }
  0x3e   : > { %v1610_v28 = vperm.slane %v301_v27, 0  ;;  %v1612_v29 = vperm.slane %v301_v27, 1 }
  0x3f   : > { %329 = vperm.xlu2 %1153, %v290_v4   ;;  %319 = vperm.xlu1 %1152, %v288_v5  }
  0x40   : > { %309 = vperm.xlu0 %1151, %v286_v6  }
  0x47   : > { %344 = vperm.xlu2 %1153, %v293_v7   ;;  %339 = vperm.xlu1 %1152, %v292_v8  }
  0x48   : > { %334 = vperm.xlu0 %1151, %v291_v9  }
  0x4f   : > { %359 = vperm.xlu2 %1153, %v296_v10   ;;  %354 = vperm.xlu1 %1152, %v295_v11  }
  0x50   : > { %349 = vperm.xlu0 %1151, %v294_v12  }
  0x57   : > { %374 = vperm.xlu2 %1153, %v299_v13   ;;  %369 = vperm.xlu1 %1152, %v298_v14  }
  0x58   : > { %364 = vperm.xlu0 %1151, %v297_v15  }
  0x5f   : > { %1155 = vset.pattern.permute.xlu2 %v1394_v17  ;;  %1154 = vset.pattern.permute.xlu1 %v1394_v17 }
  0x60   : > { %379 = vperm.xlu0 %1151, %v300_v16   ;;  %420 = vperm.xlu2 %1155, %v286_v6  }
  0x61   : > { %416 = vperm.xlu1 %1154, %v285_v3  }
  0x68   : > { %1156 = vset.pattern.permute.xlu0 %v1394_v17  ;;  %432 = vperm.xlu2 %1155, %v289_v1  }
  0x69   : > { %428 = vperm.xlu1 %1154, %v288_v5   ;;  %424 = vperm.xlu0 %1156, %v287_v2  }
  0x70   : > { %440 = vperm.xlu2 %1155, %v291_v9  }
  0x71   : > { %436 = vperm.xlu1 %1154, %v290_v4   ;;  %444 = vperm.xlu0 %1156, %v292_v8  }
  0x78   : > { %452 = vperm.xlu2 %1155, %v294_v12  }
  0x79   : > { %448 = vperm.xlu1 %1154, %v293_v7   ;;  %456 = vperm.xlu0 %1156, %v295_v11  }
  0x80   : > { %464 = vperm.xlu2 %1155, %v297_v15  }
  0x81   : > { %460 = vperm.xlu1 %1154, %v296_v10   ;;  %468 = vperm.xlu0 %1156, %v298_v14  }
  0x88   : > { %476 = vperm.xlu2 %1155, %v300_v16  }
  0x89   : > { %472 = vperm.xlu1 %1154, %v299_v13  }
  0x91   : > { %v1587_v18 = vpop.permute.xlu2 %324 }
  0x92   : > { %v387_v39 = vsub.f32 %v1587_v18, %v1610_v28 }
  0x94   : > { %v403_v46 = vmul.f32 %v387_v39, %v387_v39 }
  0x99   : > { %v1589_v19 = vpop.permute.xlu2 %329 }
  0xa1   : > { %v1591_v20 = vpop.permute.xlu2 %344 }
  0xa9   : > { %v1594_v21 = vpop.permute.xlu2 %359  ;;  %v1596_v22 = vpop.permute.xlu1 %314 }
  0xaa   : > { %v1599_v23 = vpop.permute.xlu0 %304  ;;  %v385_v12 = vsub.f32 %v1596_v22, %v1610_v28 }
  0xab   : > { %v383_v62 = vsub.f32 %v1599_v23, %v1610_v28 }
  0xad   : > { %v399_v8 = vmul.f32 %v383_v62, %v383_v62 }
  0xb1   : > { %v1604_v24 = vpop.permute.xlu2 %374  ;;  %v1606_v25 = vpop.permute.xlu1 %319 }
  0xb2   : > { %v1608_v26 = vpop.permute.xlu0 %309  ;;  %v386_v15 = vsub.f32 %v1606_v25, %v1610_v28 }
  0xb3   : > { %v384_v30 = vsub.f32 %v1608_v26, %v1610_v28 }
  0xb5   : > { %v400_v35 = vmul.f32 %v384_v30, %v384_v30 }
  0xb9   : > { %v1616_v31 = vpop.permute.xlu1 %339 }
  0xba   : > { %v1618_v32 = vpop.permute.xlu0 %334  ;;  %v1620_v33 = vpop.permute.xlu2 %420 }
  0xbb   : > { %v481_v34 = vsub.f32 %v1620_v33, %v1612_v29  ;;  %v389_v49 = vsub.f32 %v1618_v32, %v1610_v28 }
  0xbd   : > { %v497_v36 = vmul.f32 %v481_v34, %v481_v34  ;;  %v405_v57 = vmul.f32 %v389_v49, %v389_v49 }
  0xbf   : > { %v513_v38 = vadd.f32 %v497_v36, %v400_v35 }
  0xc1   : > { %v530_v40 = vsub.f32 %v1624_v37, %v513_v38  ;;  %v1629_v41 = vpop.permute.xlu1 %354 }
  0xc2   : > { %v1631_v42 = vpop.permute.xlu0 %349  ;;  %v1633_v43 = vpop.permute.xlu2 %432 }
  0xc3   : > { %v547_v44 = vmul.f32 1.442695, %v530_v40  ;;  %v484_v45 = vsub.f32 %v1633_v43, %v1612_v29  ;;  %v392_v60 = vsub.f32 %v1631_v42, %v1610_v28 }
  0xc5   : > { %1157 = vpow2.f32 %v547_v44  ;;  %v500_v47 = vmul.f32 %v484_v45, %v484_v45  ;;  %v408_v6 = vmul.f32 %v392_v60, %v392_v60  ;;  %v401_v44 = vmul.f32 %v385_v12, %v385_v12 }
  0xc6   : > { %v390_v60 = vsub.f32 %v1616_v31, %v1610_v28 }
  0xc7   : > { %v516_v48 = vadd.f32 %v500_v47, %v403_v46  ;;  %v402_v47 = vmul.f32 %v386_v15, %v386_v15 }
  0xc9   : > { %v533_v50 = vsub.f32 %v1624_v37, %v516_v48  ;;  %v1640_v51 = vpop.permute.xlu1 %369 }
  0xca   : > { %v1642_v52 = vpop.permute.xlu0 %364  ;;  %v1644_v53 = vpop.permute.xlu2 %440 }
  0xcb   : > { %v1646_v54 = vpop.eup %1157  ;;  %v553_v55 = vmul.f32 1.442695, %v533_v50  ;;  %v486_v56 = vsub.f32 %v1644_v53, %v1612_v29  ;;  %v395_v13 = vsub.f32 %v1642_v52, %v1610_v28 }
  0xcd   : > { %1159 = vpow2.f32 %v553_v55  ;;  %v502_v58 = vmul.f32 %v486_v56, %v486_v56  ;;  %v411_v45 = vmul.f32 %v395_v13, %v395_v13 }
  0xcf   : > { %v518_v59 = vadd.f32 %v502_v58, %v405_v57  ;;  %v388_v57 = vsub.f32 %v1589_v19, %v1610_v28 }
  0xd1   : > { %v535_v61 = vsub.f32 %v1624_v37, %v518_v59 }
  0xd2   : > { %v1655_v63 = vpop.permute.xlu0 %379  ;;  %v1657_v0 = vpop.permute.xlu2 %452 }
  0xd3   : > { %v1659_v1 = vpop.eup %1159  ;;  %v557_v2 = vmul.f32 1.442695, %v535_v61  ;;  %v489_v3 = vsub.f32 %v1657_v0, %v1612_v29  ;;  %v1663_v4 = vpop.permute.xlu1 %416  ;;  %v398_v58 = vsub.f32 %v1655_v63, %v1610_v28 }
  0xd4   : > { %v480_v5 = vsub.f32 %v1663_v4, %v1612_v29 }
  0xd5   : > { %1161 = vpow2.f32 %v557_v2  ;;  %v505_v7 = vmul.f32 %v489_v3, %v489_v3  ;;  %v414_v15 = vmul.f32 %v398_v58, %v398_v58 }
  0xd6   : > { %v496_v9 = vmul.f32 %v480_v5, %v480_v5 }
  0xd7   : > { %v521_v10 = vadd.f32 %v505_v7, %v408_v6 }
  0xd8   : > { %v512_v11 = vadd.f32 %v496_v9, %v399_v8 }
  0xd9   : > { %v538_v14 = vsub.f32 %v1624_v37, %v521_v10 }
  0xda   : > { %v529_v16 = vsub.f32 %v1624_v37, %v512_v11  ;;  %v1675_v17 = vpop.permute.xlu2 %464 }
  0xdb   : > { %v1677_v27 = vpop.eup %1161  ;;  %v563_v30 = vmul.f32 1.442695, %v538_v14  ;;  %v492_v34 = vsub.f32 %v1675_v17, %v1612_v29  ;;  %v1681_v35 = vpop.permute.xlu1 %428  ;;  %v404_v14 = vmul.f32 %v388_v57, %v388_v57 }
  0xdc   : > { %v1683_v36 = vpop.permute.xlu0 %424  ;;  %v545_v38 = vmul.f32 1.442695, %v529_v16  ;;  %v483_v39 = vsub.f32 %v1681_v35, %v1612_v29 }
  0xdd   : > { %v482_v40 = vsub.f32 %v1683_v36, %v1612_v29  ;;  %1163 = vpow2.f32 %v563_v30  ;;  %v508_v46 = vmul.f32 %v492_v34, %v492_v34  ;;  %v406_v30 = vmul.f32 %v390_v60, %v390_v60 }
  0xde   : > { %1165 = vpow2.f32 %v545_v38  ;;  %v499_v48 = vmul.f32 %v483_v39, %v483_v39 }
  0xdf   : > { %v498_v49 = vmul.f32 %v482_v40, %v482_v40  ;;  %v524_v50 = vadd.f32 %v508_v46, %v411_v45  ;;  %v391_v45 = vsub.f32 %v1591_v20, %v1610_v28 }
  0xe0   : > { %v515_v55 = vadd.f32 %v499_v48, %v402_v47  ;;  %v393_v47 = vsub.f32 %v1629_v41, %v1610_v28 }
  0xe1   : > { %v514_v56 = vadd.f32 %v498_v49, %v401_v44  ;;  %v541_v59 = vsub.f32 %v1624_v37, %v524_v50 }
  0xe2   : > { %v532_v61 = vsub.f32 %v1624_v37, %v515_v55  ;;  %v1698_v2 = vpop.permute.xlu2 %476 }
  0xe3   : > { %v531_v62 = vsub.f32 %v1624_v37, %v514_v56  ;;  %v1700_v3 = vpop.eup %1163  ;;  %v569_v5 = vmul.f32 1.442695, %v541_v59  ;;  %v495_v6 = vsub.f32 %v1698_v2, %v1612_v29  ;;  %v1704_v7 = vpop.permute.xlu1 %436 }
  0xe4   : > { %v1706_v8 = vpop.permute.xlu0 %444  ;;  %v1708_v9 = vpop.eup %1165  ;;  %v551_v10 = vmul.f32 1.442695, %v532_v61  ;;  %v485_v12 = vsub.f32 %v1704_v7, %v1612_v29 }
  0xe5   : > { %v549_v11 = vmul.f32 1.442695, %v531_v62  ;;  %v487_v13 = vsub.f32 %v1706_v8, %v1612_v29  ;;  %1167 = vpow2.f32 %v569_v5  ;;  %v511_v16 = vmul.f32 %v495_v6, %v495_v6 }
  0xe6   : > { %1169 = vpow2.f32 %v551_v10  ;;  %v501_v34 = vmul.f32 %v485_v12, %v485_v12  ;;  %v407_v6 = vmul.f32 %v391_v45, %v391_v45  ;;  %v409_v10 = vmul.f32 %v393_v47, %v393_v47 }
  0xe7   : > { %v503_v38 = vmul.f32 %v487_v13, %v487_v13  ;;  %1171 = vpow2.f32 %v549_v11  ;;  %v527_v39 = vadd.f32 %v511_v16, %v414_v15  ;;  %v394_v15 = vsub.f32 %v1594_v21, %v1610_v28 }
  0xe8   : > { %v517_v40 = vadd.f32 %v501_v34, %v404_v14  ;;  %v396_v16 = vsub.f32 %v1640_v51, %v1610_v28 }
  0xe9   : > { %v519_v44 = vadd.f32 %v503_v38, %v406_v30  ;;  %v544_v46 = vsub.f32 %v1624_v37, %v527_v39 }
  0xea   : > { %v534_v48 = vsub.f32 %v1624_v37, %v517_v40 }
  0xeb   : > { %v536_v49 = vsub.f32 %v1624_v37, %v519_v44  ;;  %v1721_v50 = vpop.eup %1167  ;;  %v575_v55 = vmul.f32 1.442695, %v544_v46  ;;  %v1723_v56 = vpop.permute.xlu1 %448 }
  0xec   : > { %v1725_v57 = vpop.permute.xlu0 %456  ;;  %v1727_v58 = vpop.eup %1169  ;;  %v555_v59 = vmul.f32 1.442695, %v534_v48  ;;  %v488_v61 = vsub.f32 %v1723_v56, %v1612_v29 }
  0xed   : > { %v559_v60 = vmul.f32 1.442695, %v536_v49  ;;  %v490_v62 = vsub.f32 %v1725_v57, %v1612_v29  ;;  %v1733_v5 = vpop.eup %1171  ;;  %1173 = vpow2.f32 %v575_v55  ;;  %v410_v55 = vmul.f32 %v394_v15, %v394_v15 }
  0xee   : > { %1175 = vpow2.f32 %v555_v59  ;;  %v504_v11 = vmul.f32 %v488_v61, %v488_v61  ;;  %v412_v59 = vmul.f32 %v396_v16, %v396_v16 }
  0xef   : > { %v506_v12 = vmul.f32 %v490_v62, %v490_v62  ;;  %1177 = vpow2.f32 %v559_v60 }
  0xf0   : > { %v520_v13 = vadd.f32 %v504_v11, %v407_v6 }
  0xf1   : > { %v522_v14 = vadd.f32 %v506_v12, %v409_v10  ;;  %v397_v10 = vsub.f32 %v1604_v24, %v1610_v28 }
  0xf2   : > { %v537_v30 = vsub.f32 %v1624_v37, %v520_v13 }
  0xf3   : > { %v539_v34 = vsub.f32 %v1624_v37, %v522_v14  ;;  %v1741_v38 = vpop.eup %1173  ;;  %v1743_v39 = vpop.permute.xlu1 %460 }
  0xf4   : > { %v1745_v40 = vpop.permute.xlu0 %468  ;;  %v1747_v44 = vpop.eup %1175  ;;  %v561_v45 = vmul.f32 1.442695, %v537_v30  ;;  %v491_v47 = vsub.f32 %v1743_v39, %v1612_v29 }
  0xf5   : > { %v565_v46 = vmul.f32 1.442695, %v539_v34  ;;  %v493_v48 = vsub.f32 %v1745_v40, %v1612_v29  ;;  %v1753_v49 = vpop.eup %1177 }
  0xf6   : > { %1179 = vpow2.f32 %v561_v45  ;;  %v507_v60 = vmul.f32 %v491_v47, %v491_v47  ;;  %v413_v45 = vmul.f32 %v397_v10, %v397_v10 }
  0xf7   : > { %v509_v61 = vmul.f32 %v493_v48, %v493_v48  ;;  %1181 = vpow2.f32 %v565_v46 }
  0xf8   : > { %v523_v62 = vadd.f32 %v507_v60, %v410_v55 }
  0xf9   : > { %v525_v6 = vadd.f32 %v509_v61, %v412_v59 }
  0xfa   : > { %v540_v11 = vsub.f32 %v1624_v37, %v523_v62 }
  0xfb   : > { %v542_v12 = vsub.f32 %v1624_v37, %v525_v6  ;;  %v1759_v13 = vpop.permute.xlu1 %472 }
  0xfc   : > { %v1761_v14 = vpop.eup %1179  ;;  %v567_v15 = vmul.f32 1.442695, %v540_v11  ;;  %v494_v30 = vsub.f32 %v1759_v13, %v1612_v29 }
  0xfd   : > { %v571_v16 = vmul.f32 1.442695, %v542_v12  ;;  %v1765_v34 = vpop.eup %1181 }
  0xfe   : > { %1183 = vpow2.f32 %v567_v15  ;;  %v510_v28 = vmul.f32 %v494_v30, %v494_v30 }
  0xff   : > { %1185 = vpow2.f32 %v571_v16 }
 0x100   : > { %v526_v46 = vadd.f32 %v510_v28, %v413_v45 }
 0x102   : > { %v543_v47 = vsub.f32 %v1624_v37, %v526_v46 }
 0x104   : > { %v1768_v48 = vpop.eup %1183  ;;  %v573_v55 = vmul.f32 1.442695, %v543_v47 }
 0x105   : > { %v1770_v59 = vpop.eup %1185 }
 0x106   : > { %1187 = vpow2.f32 %v573_v55 }
 0x108   : > { %580 = sbr.rel (%p1021_p10) target bundleno = 285 (0x11d), region = 44 }
 0x10c   : > { %v1772_v60 = vpop.eup %1187 }
 0x10d   : > { %581 = vst [vmem:[%s1775_s0] sm:$0xff] %v1708_v9 }
 0x10e   : > { %582 = vst [vmem:[%s1775_s0 + $0x8] sm:$0xff] %v1646_v54 }
 0x10f   : > { %583 = vst [vmem:[%s1775_s0 + $0x10] sm:$0xff] %v1733_v5 }
 0x110   : > { %584 = vst [vmem:[%s1775_s0 + $0x18] sm:$0xff] %v1727_v58 }
 0x111   : > { %585 = vst [vmem:[%s1775_s0 + $0x20] sm:$0xff] %v1659_v1 }
 0x112   : > { %586 = vst [vmem:[%s1775_s0 + $0x28] sm:$0xff] %v1747_v44 }
 0x113   : > { %587 = vst [vmem:[%s1775_s0 + $0x30] sm:$0xff] %v1677_v27 }
 0x114   : > { %588 = vst [vmem:[%s1775_s0 + $0x38] sm:$0xff] %v1753_v49 }
 0x115   : > { %589 = vst [vmem:[%s1775_s0 + $0x40] sm:$0xff] %v1761_v14 }
 0x116   : > { %590 = vst [vmem:[%s1775_s0 + $0x48] sm:$0xff] %v1700_v3 }
 0x117   : > { %591 = vst [vmem:[%s1775_s0 + $0x50] sm:$0xff] %v1765_v34 }
 0x118   : > { %592 = vst [vmem:[%s1775_s0 + $0x58] sm:$0xff] %v1768_v48 }
 0x119   : > { %593 = vst [vmem:[%s1775_s0 + $0x60] sm:$0xff] %v1721_v50 }
 0x11a   : > { %594 = vst [vmem:[%s1775_s0 + $0x68] sm:$0xff] %v1770_v59 }
 0x11b   : > { %595 = vst [vmem:[%s1775_s0 + $0x70] sm:$0xff] %v1772_v60 }
 0x11c   : > { %596 = vst [vmem:[%s1775_s0 + $0x78] sm:$0xff] %v1741_v38 }
 0x11d PF: > { %p1022_p11 = scmp.ne.s32.totalorder %s1378_s25, %s1374_s24 }
 0x11f   : > { %600 = sbr.rel (%p1022_p11) target bundleno = 317 (0x13d), region = 48 }
 0x124   : > { %v601_v29 = vlaneseq  ;;  %v1819_v6 = vstv %s1585_s7 }
 0x126   : > { %v602_v61 = vshrl.u32 %v601_v29, 7  ;;  %v1816_v62 = vand.u32 127, %v601_v29 }
 0x128   : > { %vm620_vm0 = vcmp.eq.s32.totalorder %v602_v61, %v1816_v62  ;;  %v603_v10 = vadd.s32 8, %v602_v61  ;;  %v604_v11 = vadd.s32 16, %v602_v61  ;;  %v605_v12 = vadd.s32 24, %v602_v61 }
 0x129   : > { %v637_v15 = vsel %vm620_vm0, %v1819_v6, 0.0  ;;  %v606_v16 = vadd.s32 32, %v602_v61  ;;  %v607_v30 = vadd.s32 40, %v602_v61  ;;  %v608_v45 = vadd.s32 48, %v602_v61 }
 0x12a   : > { %v653_v28 = vadd.f32 %v1708_v9, %v637_v15  ;;  %vm621_vm1 = vcmp.eq.s32.totalorder %v603_v10, %v1816_v62  ;;  %vm622_vm2 = vcmp.eq.s32.totalorder %v604_v11, %v1816_v62  ;;  %vm623_vm3 = vcmp.eq.s32.totalorder %v605_v12, %v1816_v62 }
 0x12b   : > { %v638_v46 = vsel %vm621_vm1, %v1819_v6, 0.0  ;;  %v639_v47 = vsel %vm622_vm2, %v1819_v6, 0.0  ;;  %v640_v55 = vsel %vm623_vm3, %v1819_v6, 0.0  ;;  %vm624_vm4 = vcmp.eq.s32.totalorder %v606_v16, %v1816_v62 }
 0x12c   : > { %669 = vst [vmem:[%s1775_s0] sm:$0xff] %v653_v28  ;;  %v654_v29 = vadd.f32 %v1646_v54, %v638_v46  ;;  %v655_v9 = vadd.f32 %v1733_v5, %v639_v47  ;;  %v656_v10 = vadd.f32 %v1727_v58, %v640_v55  ;;  %v641_v11 = vsel %vm624_vm4, %v1819_v6, 0.0 }
 0x12d   : > { %v657_v12 = vadd.f32 %v1659_v1, %v641_v11  ;;  %vm625_vm5 = vcmp.eq.s32.totalorder %v607_v30, %v1816_v62  ;;  %vm626_vm6 = vcmp.eq.s32.totalorder %v608_v45, %v1816_v62  ;;  %v609_v15 = vadd.s32 56, %v602_v61 }
 0x12e   : > { %670 = vst [vmem:[%s1775_s0 + $0x8] sm:$0xff] %v654_v29  ;;  %v642_v16 = vsel %vm625_vm5, %v1819_v6, 0.0  ;;  %v643_v54 = vsel %vm626_vm6, %v1819_v6, 0.0  ;;  %v610_v28 = vadd.s32 64, %v602_v61  ;;  %v611_v5 = vadd.s32 72, %v602_v61 }
 0x12f   : > { %671 = vst [vmem:[%s1775_s0 + $0x10] sm:$0xff] %v655_v9  ;;  %v658_v58 = vadd.f32 %v1747_v44, %v642_v16  ;;  %v659_v46 = vadd.f32 %v1677_v27, %v643_v54  ;;  %vm627_vm7 = vcmp.eq.s32.totalorder %v609_v15, %v1816_v62  ;;  %v612_v1 = vadd.s32 80, %v602_v61 }
 0x130   : > { %672 = vst [vmem:[%s1775_s0 + $0x18] sm:$0xff] %v656_v10  ;;  %v644_v30 = vsel %vm627_vm7, %v1819_v6, 0.0  ;;  %vm628_vm8 = vcmp.eq.s32.totalorder %v610_v28, %v1816_v62  ;;  %vm629_vm9 = vcmp.eq.s32.totalorder %v611_v5, %v1816_v62  ;;  %v613_v45 = vadd.s32 88, %v602_v61 }
 0x131   : > { %673 = vst [vmem:[%s1775_s0 + $0x20] sm:$0xff] %v657_v12  ;;  %v660_v47 = vadd.f32 %v1753_v49, %v644_v30  ;;  %v645_v44 = vsel %vm628_vm8, %v1819_v6, 0.0  ;;  %v646_v27 = vsel %vm629_vm9, %v1819_v6, 0.0  ;;  %vm630_vm10 = vcmp.eq.s32.totalorder %v612_v1, %v1816_v62 }
 0x132   : > { %674 = vst [vmem:[%s1775_s0 + $0x28] sm:$0xff] %v658_v58  ;;  %v661_v55 = vadd.f32 %v1761_v14, %v645_v44  ;;  %v662_v29 = vadd.f32 %v1700_v3, %v646_v27  ;;  %v647_v9 = vsel %vm630_vm10, %v1819_v6, 0.0  ;;  %vm631_vm11 = vcmp.eq.s32.totalorder %v613_v45, %v1816_v62 }
 0x133   : > { %675 = vst [vmem:[%s1775_s0 + $0x30] sm:$0xff] %v659_v46  ;;  %v663_v49 = vadd.f32 %v1765_v34, %v647_v9  ;;  %v648_v10 = vsel %vm631_vm11, %v1819_v6, 0.0  ;;  %v614_v11 = vadd.s32 96, %v602_v61  ;;  %v615_v12 = vadd.s32 104, %v602_v61 }
 0x134   : > { %676 = vst [vmem:[%s1775_s0 + $0x38] sm:$0xff] %v660_v47  ;;  %v664_v15 = vadd.f32 %v1768_v48, %v648_v10  ;;  %v616_v14 = vadd.s32 112, %v602_v61  ;;  %v617_v16 = vadd.s32 120, %v602_v61 }
 0x135   : > { %677 = vst [vmem:[%s1775_s0 + $0x40] sm:$0xff] %v661_v55  ;;  %vm632_vm12 = vcmp.eq.s32.totalorder %v614_v11, %v1816_v62  ;;  %vm633_vm13 = vcmp.eq.s32.totalorder %v615_v12, %v1816_v62 }
 0x136   : > { %678 = vst [vmem:[%s1775_s0 + $0x48] sm:$0xff] %v662_v29  ;;  %v649_v3 = vsel %vm632_vm12, %v1819_v6, 0.0  ;;  %v650_v34 = vsel %vm633_vm13, %v1819_v6, 0.0  ;;  %vm634_vm14 = vcmp.eq.s32.totalorder %v616_v14, %v1816_v62  ;;  %vm635_vm15 = vcmp.eq.s32.totalorder %v617_v16, %v1816_v62 }
 0x137   : > { %679 = vst [vmem:[%s1775_s0 + $0x50] sm:$0xff] %v663_v49  ;;  %v665_v48 = vadd.f32 %v1721_v50, %v649_v3  ;;  %v666_v61 = vadd.f32 %v1770_v59, %v650_v34  ;;  %v651_v54 = vsel %vm634_vm14, %v1819_v6, 0.0  ;;  %v652_v28 = vsel %vm635_vm15, %v1819_v6, 0.0 }
 0x138   : > { %680 = vst [vmem:[%s1775_s0 + $0x58] sm:$0xff] %v664_v15  ;;  %v667_v5 = vadd.f32 %v1772_v60, %v651_v54  ;;  %v668_v58 = vadd.f32 %v1741_v38, %v652_v28 }
 0x139   : > { %681 = vst [vmem:[%s1775_s0 + $0x60] sm:$0xff] %v665_v48 }
 0x13a   : > { %682 = vst [vmem:[%s1775_s0 + $0x68] sm:$0xff] %v666_v61 }
 0x13b   : > { %683 = vst [vmem:[%s1775_s0 + $0x70] sm:$0xff] %v667_v5 }
 0x13c   : > { %684 = vst [vmem:[%s1775_s0 + $0x78] sm:$0xff] %v668_v58 }
 0x13d PF: > { %p1023_p0 = scmp.ne.s32.totalorder %s1374_s24, 0 }
 0x13e   : > { %s2097_s3 = sld [smem:[#allocation19_spill]] (!%p1023_p0) }
 0x13f   : > { %688 = sbr.rel (%p1023_p0) target bundleno = 372 (0x174), region = 52 }
 0x144   : > { %v689_v50 = vld [vmem:[%s2097_s3] sm:$0x3] }
 0x145   : > { %v1889_v59 = vperm.slane %v689_v50, 0  ;;  %v1891_v62 = vperm.slane %v689_v50, 1 }
 0x147   : > { %v691_v60 = vsub.f32 %v1599_v23, %v1889_v59  ;;  %v724_v38 = vsub.f32 %v1663_v4, %v1891_v62  ;;  %v692_v6 = vsub.f32 %v1608_v26, %v1889_v59  ;;  %v725_v46 = vsub.f32 %v1620_v33, %v1891_v62 }
 0x148   : > { %v693_v1 = vsub.f32 %v1596_v22, %v1889_v59  ;;  %v726_v30 = vsub.f32 %v1683_v36, %v1891_v62  ;;  %v694_v45 = vsub.f32 %v1606_v25, %v1889_v59  ;;  %v727_v23 = vsub.f32 %v1681_v35, %v1891_v62 }
 0x149   : > { %v707_v47 = vmul.f32 %v691_v60, %v691_v60  ;;  %v740_v4 = vmul.f32 %v724_v38, %v724_v38  ;;  %v708_v44 = vmul.f32 %v692_v6, %v692_v6  ;;  %v741_v27 = vmul.f32 %v725_v46, %v725_v46 }
 0x14a   : > { %v709_v26 = vmul.f32 %v693_v1, %v693_v1  ;;  %v742_v55 = vmul.f32 %v726_v30, %v726_v30  ;;  %v710_v29 = vmul.f32 %v694_v45, %v694_v45  ;;  %v743_v33 = vmul.f32 %v727_v23, %v727_v23 }
 0x14b   : > { %v756_v9 = vadd.f32 %v740_v4, %v707_v47  ;;  %v757_v49 = vadd.f32 %v741_v27, %v708_v44  ;;  %v695_v22 = vsub.f32 %v1587_v18, %v1889_v59  ;;  %v728_v36 = vsub.f32 %v1633_v43, %v1891_v62 }
 0x14c   : > { %v758_v25 = vadd.f32 %v742_v55, %v709_v26  ;;  %v759_v10 = vadd.f32 %v743_v33, %v710_v29  ;;  %v696_v35 = vsub.f32 %v1589_v19, %v1889_v59  ;;  %v729_v11 = vsub.f32 %v1704_v7, %v1891_v62 }
 0x14d   : > { %v772_v12 = vsub.f32 %v1624_v37, %v756_v9  ;;  %v773_v15 = vsub.f32 %v1624_v37, %v757_v49  ;;  %v711_v14 = vmul.f32 %v695_v22, %v695_v22  ;;  %v744_v16 = vmul.f32 %v728_v36, %v728_v36 }
 0x14e   : > { %v774_v3 = vsub.f32 %v1624_v37, %v758_v25  ;;  %v775_v18 = vsub.f32 %v1624_v37, %v759_v10  ;;  %v712_v34 = vmul.f32 %v696_v35, %v696_v35  ;;  %v745_v43 = vmul.f32 %v729_v11, %v729_v11 }
 0x14f   : > { %v788_v48 = vmul.f32 1.442695, %v772_v12  ;;  %v790_v61 = vmul.f32 1.442695, %v773_v15  ;;  %v760_v54 = vadd.f32 %v744_v16, %v711_v14  ;;  %v697_v19 = vsub.f32 %v1618_v32, %v1889_v59 }
 0x150   : > { %v792_v28 = vmul.f32 1.442695, %v774_v3  ;;  %v794_v7 = vmul.f32 1.442695, %v775_v18  ;;  %v761_v5 = vadd.f32 %v745_v43, %v712_v34  ;;  %v730_v58 = vsub.f32 %v1644_v53, %v1891_v62 }
 0x151   : > { %1189 = vpow2.f32 %v788_v48  ;;  %v776_v50 = vsub.f32 %v1624_v37, %v760_v54  ;;  %v713_v60 = vmul.f32 %v697_v19, %v697_v19  ;;  %v698_v38 = vsub.f32 %v1616_v31, %v1889_v59 }
 0x152   : > { %1191 = vpow2.f32 %v790_v61  ;;  %v777_v6 = vsub.f32 %v1624_v37, %v761_v5  ;;  %v746_v46 = vmul.f32 %v730_v58, %v730_v58  ;;  %v731_v32 = vsub.f32 %v1706_v8, %v1891_v62 }
 0x153   : > { %1193 = vpow2.f32 %v792_v28  ;;  %v796_v1 = vmul.f32 1.442695, %v776_v50  ;;  %v714_v30 = vmul.f32 %v698_v38, %v698_v38  ;;  %v699_v53 = vsub.f32 %v1591_v20, %v1889_v59 }
 0x154   : > { %1195 = vpow2.f32 %v794_v7  ;;  %v798_v45 = vmul.f32 1.442695, %v777_v6  ;;  %v762_v23 = vadd.f32 %v746_v46, %v713_v60  ;;  %v747_v47 = vmul.f32 %v731_v32, %v731_v32 }
 0x155   : > { %1197 = vpow2.f32 %v796_v1  ;;  %v715_v31 = vmul.f32 %v699_v53, %v699_v53  ;;  %v732_v4 = vsub.f32 %v1723_v56, %v1891_v62  ;;  %v700_v44 = vsub.f32 %v1631_v42, %v1889_v59 }
 0x156   : > { %1199 = vpow2.f32 %v798_v45  ;;  %v778_v8 = vsub.f32 %v1624_v37, %v762_v23  ;;  %v763_v27 = vadd.f32 %v747_v47, %v714_v30  ;;  %v733_v20 = vsub.f32 %v1657_v0, %v1891_v62 }
 0x157   : > { %v1190_v26 = vpop.eup %1189  ;;  %v748_v55 = vmul.f32 %v732_v4, %v732_v4  ;;  %v716_v29 = vmul.f32 %v700_v44, %v700_v44  ;;  %v701_v33 = vsub.f32 %v1629_v41, %v1889_v59  ;;  %v734_v56 = vsub.f32 %v1725_v57, %v1891_v62 }
 0x158   : > { %v1192_v9 = vpop.eup %1191  ;;  %820 = vst [vmem:[%s1778_s9] sm:$0xff] %v1190_v26  ;;  %v800_v42 = vmul.f32 1.442695, %v778_v8  ;;  %v779_v49 = vsub.f32 %v1624_v37, %v763_v27  ;;  %v749_v22 = vmul.f32 %v733_v20, %v733_v20  ;;  %v702_v0 = vsub.f32 %v1594_v21, %v1889_v59 }
 0x159   : > { %v1194_v36 = vpop.eup %1193  ;;  %821 = vst [vmem:[%s1778_s9 + $0x8] sm:$0xff] %v1192_v9  ;;  %v764_v25 = vadd.f32 %v748_v55, %v715_v31  ;;  %v717_v10 = vmul.f32 %v701_v33, %v701_v33  ;;  %v750_v35 = vmul.f32 %v734_v56, %v734_v56  ;;  %v735_v41 = vsub.f32 %v1743_v39, %v1891_v62 }
 0x15a   : > { %v1196_v57 = vpop.eup %1195  ;;  %822 = vst [vmem:[%s1778_s9 + $0x10] sm:$0xff] %v1194_v36  ;;  %1201 = vpow2.f32 %v800_v42  ;;  %v802_v11 = vmul.f32 1.442695, %v779_v49  ;;  %v765_v12 = vadd.f32 %v749_v22, %v716_v29  ;;  %v718_v15 = vmul.f32 %v702_v0, %v702_v0 }
 0x15b   : > { %v1198_v14 = vpop.eup %1197  ;;  %823 = vst [vmem:[%s1778_s9 + $0x18] sm:$0xff] %v1196_v57  ;;  %v780_v21 = vsub.f32 %v1624_v37, %v764_v25  ;;  %v766_v16 = vadd.f32 %v750_v35, %v717_v10  ;;  %v751_v3 = vmul.f32 %v735_v41, %v735_v41  ;;  %v703_v18 = vsub.f32 %v1642_v52, %v1889_v59 }
 0x15c   : > { %v1200_v34 = vpop.eup %1199  ;;  %824 = vst [vmem:[%s1778_s9 + $0x20] sm:$0xff] %v1198_v14  ;;  %1203 = vpow2.f32 %v802_v11  ;;  %v781_v39 = vsub.f32 %v1624_v37, %v765_v12  ;;  %v736_v43 = vsub.f32 %v1675_v17, %v1891_v62  ;;  %v704_v48 = vsub.f32 %v1640_v51, %v1889_v59 }
 0x15d   : > { %825 = vst [vmem:[%s1778_s9 + $0x28] sm:$0xff] %v1200_v34  ;;  %v804_v61 = vmul.f32 1.442695, %v780_v21  ;;  %v782_v54 = vsub.f32 %v1624_v37, %v766_v16  ;;  %v767_v19 = vadd.f32 %v751_v3, %v718_v15  ;;  %v719_v28 = vmul.f32 %v703_v18, %v703_v18 }
 0x15e   : > { %v806_v7 = vmul.f32 1.442695, %v781_v39  ;;  %v752_v52 = vmul.f32 %v736_v43, %v736_v43  ;;  %v720_v5 = vmul.f32 %v704_v48, %v704_v48  ;;  %v737_v58 = vsub.f32 %v1745_v40, %v1891_v62 }
 0x15f   : > { %1205 = vpow2.f32 %v804_v61  ;;  %v808_v50 = vmul.f32 1.442695, %v782_v54  ;;  %v783_v17 = vsub.f32 %v1624_v37, %v767_v19  ;;  %v705_v51 = vsub.f32 %v1604_v24, %v1889_v59 }
 0x160   : > { %v1202_v60 = vpop.eup %1201  ;;  %1207 = vpow2.f32 %v806_v7  ;;  %v768_v38 = vadd.f32 %v752_v52, %v719_v28  ;;  %v753_v6 = vmul.f32 %v737_v58, %v737_v58  ;;  %v738_v46 = vsub.f32 %v1759_v13, %v1891_v62 }
 0x161   : > { %826 = vst [vmem:[%s1778_s9 + $0x30] sm:$0xff] %v1202_v60  ;;  %1209 = vpow2.f32 %v808_v50  ;;  %v810_v32 = vmul.f32 1.442695, %v783_v17  ;;  %v721_v1 = vmul.f32 %v705_v51, %v705_v51  ;;  %v706_v40 = vsub.f32 %v1655_v63, %v1889_v59 }
 0x162   : > { %v1204_v30 = vpop.eup %1203  ;;  %v784_v53 = vsub.f32 %v1624_v37, %v768_v38  ;;  %v769_v24 = vadd.f32 %v753_v6, %v720_v5  ;;  %v754_v45 = vmul.f32 %v738_v46, %v738_v46  ;;  %v739_v23 = vsub.f32 %v1698_v2, %v1891_v62 }
 0x163   : > { %827 = vst [vmem:[%s1778_s9 + $0x38] sm:$0xff] %v1204_v30  ;;  %1211 = vpow2.f32 %v810_v32  ;;  %v722_v13 = vmul.f32 %v706_v40, %v706_v40 }
 0x164   : > { %v812_v47 = vmul.f32 1.442695, %v784_v53  ;;  %v785_v31 = vsub.f32 %v1624_v37, %v769_v24  ;;  %v770_v4 = vadd.f32 %v754_v45, %v721_v1  ;;  %v755_v44 = vmul.f32 %v739_v23, %v739_v23 }
 0x165   : > { %v1206_v63 = vpop.eup %1205 }
 0x166   : > { %v1208_v59 = vpop.eup %1207  ;;  %828 = vst [vmem:[%s1778_s9 + $0x40] sm:$0xff] %v1206_v63  ;;  %1213 = vpow2.f32 %v812_v47  ;;  %v814_v8 = vmul.f32 1.442695, %v785_v31  ;;  %v786_v27 = vsub.f32 %v1624_v37, %v770_v4  ;;  %v771_v2 = vadd.f32 %v755_v44, %v722_v13 }
 0x167   : > { %v1210_v62 = vpop.eup %1209  ;;  %829 = vst [vmem:[%s1778_s9 + $0x48] sm:$0xff] %v1208_v59 }
 0x168   : > { %830 = vst [vmem:[%s1778_s9 + $0x50] sm:$0xff] %v1210_v62  ;;  %1215 = vpow2.f32 %v814_v8  ;;  %v816_v20 = vmul.f32 1.442695, %v786_v27  ;;  %v787_v26 = vsub.f32 %v1624_v37, %v771_v2 }
 0x169   : > { %v1212_v55 = vpop.eup %1211 }
 0x16a   : > { %831 = vst [vmem:[%s1778_s9 + $0x58] sm:$0xff] %v1212_v55  ;;  %1217 = vpow2.f32 %v816_v20  ;;  %v818_v29 = vmul.f32 1.442695, %v787_v26 }
 0x16c   : > { %v1214_v33 = vpop.eup %1213  ;;  %1219 = vpow2.f32 %v818_v29 }
 0x16d   : > { %832 = vst [vmem:[%s1778_s9 + $0x60] sm:$0xff] %v1214_v33 }
 0x16e   : > { %v1216_v56 = vpop.eup %1215 }
 0x16f   : > { %833 = vst [vmem:[%s1778_s9 + $0x68] sm:$0xff] %v1216_v56 }
 0x170   : > { %v1218_v9 = vpop.eup %1217 }
 0x171   : > { %834 = vst [vmem:[%s1778_s9 + $0x70] sm:$0xff] %v1218_v9 }
 0x172   : > { %v1220_v42 = vpop.eup %1219 }
 0x173   : > { %835 = vst [vmem:[%s1778_s9 + $0x78] sm:$0xff] %v1220_v42 }
 0x174 PF: > { %s1033_s8 = sshll.u32 %s1378_s25, 5  ;;  %s856_s12 = sshll.u32 %s1775_s0, 4  ;;  %s857_s12 = int_to_ptr.vmem [resolvable:$true] %s856_s12 }
 0x175   : > { %s853_s7 = sadd.s32 %s1374_s24, %s1033_s8  ;;  %s2098_s4 = sld [smem:[#allocation20_spill]] }
 0x176   : > { %s1028_s16 = sshll.u32 %s853_s7, 3  ;;  %s2099_s2 = sand.u32 1, %s1366_s22  }
 0x177   : > { %s837_s3 = scalar_lea.sflag [#allocation3], %s2099_s2 }
 0x17b   : > { %s855_s13 = scalar_lea.hbm %s2098_s4, %s1028_s16  ;;  %s1256_s0 = scalar_lea.hbm %s2098_s4, 512 }
 0x17c   : > { %s858_s1 = sshll.u32 %s855_s13, 4  ;;  %s859_s1 = int_to_ptr.hbm [resolvable:$true] %s858_s1 }
 0x17d   : > { %s1250_s27 = sshra.s32 %s859_s1, 4  ;;  %s1251_s27 = int_to_ptr.hbm [resolvable:$true] %s1250_s27 }
 0x17e   : > { %s1252_s26 = scalar_lea.hbm %s1251_s27, 128  ;;  %p1257_p2 = scmp.lt.s32.totalorder %s1251_s27, %s2098_s4 }
 0x17f   : > { %p1253_p1 = scmp.ne.s32.totalorder %s1251_s27, %s1252_s26  ;;  %p1258_p8 = scmp.lt.s32.totalorder %s1256_s0, %s1252_s26 }
 0x181   : > { %p1254_p4 = pnand %p1253_p1, %p1503_p3  ;;  %p1259_p6 = por %p1258_p8, %p1257_p2 }
 0x183   : > { %p1255_p5 = pneg %p1254_p4 }
 0x185   : > { %p1260_p9 = pnand %p1259_p6, %p1255_p5 }
 0x187   : > { %1263 = shalt.err (!%p1260_p9)
}
 0x188   : > { %s1395_s2 = smov 128   ;;  %s1396_s16 = smov 256  }
 0x189   : > { %s1397_s10 = smov 8   ;;  %s1034_s29 = sshll.u32 %s1378_s25, 7 }
 0x18a   : > { %1039 = dma.vmem_to_hbm [thread:$0]  (%p1503_p3), %s857_s12, 2048, %s859_s1, %s837_s3, %s1395_s2, %s1396_s16, %s1397_s10  }
 0x18b   : > { %s872_s24 = scalar_lea.hbm %s2069_s5, %s1034_s29  ;;  %s873_s27 = sshll.u32 %s1778_s9, 4  ;;  %s874_s27 = int_to_ptr.vmem [resolvable:$true] %s873_s27 }
 0x18c   : > { %s875_s26 = sshll.u32 %s872_s24, 4  ;;  %s2100_s0 = sand.u32 1, %s1354_s19   ;;  %s876_s26 = int_to_ptr.hbm [resolvable:$true] %s875_s26 }
 0x18d   : > { %s842_s8 = scalar_lea.sflag [#allocation7], %s2100_s0  ;;  %s1278_s7 = sshra.s32 %s876_s26, 4  ;;  %s1279_s7 = int_to_ptr.hbm [resolvable:$true] %s1278_s7 }
 0x18e   : > { %s1280_s4 = scalar_lea.hbm %s1279_s7, 128  ;;  %s1284_s3 = scalar_lea.hbm %s2069_s5, 256 }
 0x18f   : > { %p1281_p10 = scmp.ne.s32.totalorder %s1279_s7, %s1280_s4  ;;  %p1285_p3 = scmp.lt.s32.totalorder %s1279_s7, %s2069_s5 }
 0x190   : > { %p1286_p1 = scmp.lt.s32.totalorder %s1284_s3, %s1280_s4 }
 0x191   : > { %p1282_p11 = pnand %p1281_p10, %p1530_p12 }
 0x192   : > { %p1287_p4 = por %p1286_p1, %p1285_p3 }
 0x193   : > { %p1283_p0 = pneg %p1282_p11 }
 0x195   : > { %p1288_p5 = pnand %p1287_p4, %p1283_p0 }
 0x197   : > { %1291 = shalt.err (!%p1288_p5)
}
 0x198   : > { %1040 = dma.vmem_to_hbm [thread:$0]  (%p1530_p12), %s874_s27, 2048, %s876_s26, %s842_s8, %s1395_s2, %s1395_s2, %s1397_s10  }
 0x199 PF: > { %p1056_p2 = scmp.ge.s32.totalorder %s1390_s28, 2  ;;  %s890_s9 = sand.u32 1, %s1362_s21  }
 0x19a   : > { %s891_s16 = scalar_lea.sflag [#allocation3], %s890_s9 }
 0x19b   : > { %p1048_p8 = pnand %p1056_p2, %p1518_p7 }
 0x19d   : > { %p1049_p6 = pneg %p1048_p8 }
 0x19f   : > { %1341 = dma.done.wait (%p1049_p6), %s891_s16, 2048  }
 0x1a0   : > { %1343 = vsyncadd (%p1049_p6), %s891_s16, 4294965248  ;;  %s900_s4 = sand.u32 1, %s1350_s18   ;;  %p1051_p9 = pnand %p1056_p2, %p1542_p13 }
 0x1a1   : > { %s901_s17 = scalar_lea.sflag [#allocation7], %s900_s4 }
 0x1a2   : > { %p1052_p10 = pneg %p1051_p9 }
 0x1a4   : > { %1345 = dma.done.wait (%p1052_p10), %s901_s17, 2048  }
 0x1a5   : > { %1347 = vsyncadd (%p1052_p10), %s901_s17, 4294965248  ;;  %s23_s28 = sadd.s32 1, %s1390_s28   ;;  %s2101_s14 = sld [smem:[#allocation15_spill]] }
 0x1a6   : > { %p20_p12 = scmp.ge.s32.totalorder %s23_s28, 6   ;;  %s2102_s24 = sld [smem:[#allocation11_spill]] }
 0x1a7   : > { %s2103_s25 = sld [smem:[#allocation12_spill]]  ;;  %s2106_s18 = smov %s1354_s19 }
 0x1a8   : > { %s2104_s26 = sld [smem:[#allocation13_spill]]  ;;  %s2107_s19 = smov %s1358_s20 }
 0x1a9   : > { %s2105_s27 = sld [smem:[#allocation14_spill]]  ;;  %s2108_s20 = smov %s1535_s30 }
 0x1aa   : > { %s2109_s21 = smov %s1366_s22  ;;  %s2110_s22 = smov %s1370_s23 }
 0x1ab   : > { %s2111_s23 = smov %s2101_s14  ;;  %22 = sbr.rel (!%p20_p12) target bundleno = 16 (0x10), region = 108 }
 0x1b0   :  { %907 = vsyncpa [#allocation3], 1 }
 0x1b1   :  { %909 = vsyncpa [#allocation3 + $0x1], 1 }
 0x1b2   :  { %910 = vsyncpa [#allocation7], 1 }
 0x1b3   :  { %912 = vsyncpa [#allocation7 + $0x1], 1 }
 0x1b4   :  { %913 = vsyncpa [#allocation4], 1 }
 0x1b5   :  { %915 = vsyncpa [#allocation4 + $0x1], 1 }

</bundles_post_ra>
